<compile_context>
chip_gen: v7x
topology: tpu7x:2x2x1
jax: 0.10.0
libtpu: 0.0.40
codegen_flags: <defaults>
</compile_context>

<pallas_src>
import functools

import jax
import jax.numpy as jnp
from jax.experimental import pallas as pl
from jax.experimental.pallas import tpu as pltpu


def critic_q_kernel(s_ref, a_ref, w1s_ref, w1a_ref, b1_ref, w2_ref, b2_ref,
                    wo_ref, bo_ref, out_ref):
    # Layer 1: split first matmul (state part + action part) == concat matmul.
    h = (jnp.dot(s_ref[...], w1s_ref[...], preferred_element_type=jnp.float32)
         + jnp.dot(a_ref[...], w1a_ref[...], preferred_element_type=jnp.float32)
         + b1_ref[...])
    h = jnp.maximum(h, 0.0)

    # Layer 2: Linear + ReLU.
    h = jnp.dot(h, w2_ref[...], preferred_element_type=jnp.float32) + b2_ref[...]
    h = jnp.maximum(h, 0.0)

    # Output head: wo_t (1, H2) contracted against h (bt, H2) along H2
    # -> (1, bt), i.e. the Q values laid out lane-dense (batch on lanes).
    q = jax.lax.dot_general(
        wo_ref[...], h,
        dimension_numbers=(((1,), (1,)), ((), ())),
        preferred_element_type=jnp.float32)
    out_ref[...] = (q + bo_ref[...]).astype(out_ref.dtype)


@functools.partial(jax.jit, static_argnames=("batch_tile",))
def critic_q_forward(state, action, params, *, batch_tile=128):
    """Pallas-backed CriticQ forward pass.

    state:  (B, state_dim) float32
    action: (B, action_dim) float32
    params: dict with w1 (D, H1), b1 (1, H1), w2 (H1, H2), b2 (1, H2),
            wo (H2, 1), bo (1, 1), where D = state_dim + action_dim
    returns (B, 1) float32
    """
    assert batch_tile % 128 == 0, "batch_tile must be a multiple of 128"
    B, state_dim = state.shape
    action_dim = action.shape[1]
    H1 = params["w1"].shape[1]
    H2 = params["w2"].shape[1]

    # Pad batch up to a multiple of the tile (padded rows are discarded below).
    n_tiles = -(-B // batch_tile)
    B_pad = n_tiles * batch_tile
    if B_pad != B:
        state = jnp.pad(state, ((0, B_pad - B), (0, 0)))
        action = jnp.pad(action, ((0, B_pad - B), (0, 0)))

    # Split W1 so the concat can be fused into the kernel; transpose Wout so
    # the head matmul produces a lane-dense (1, batch_tile) row directly.
    w1s = params["w1"][:state_dim]      # (state_dim, H1)
    w1a = params["w1"][state_dim:]      # (action_dim, H1)
    wo_t = params["wo"].T               # (1, H2)

    full = lambda shape: pl.BlockSpec(shape, lambda i: (0, 0))

    out = pl.pallas_call(
        critic_q_kernel,
        out_shape=jax.ShapeDtypeStruct((1, B_pad), jnp.float32),
        grid_spec=pltpu.PrefetchScalarGridSpec(
            num_scalar_prefetch=0,
            grid=(n_tiles,),
            in_specs=[
                pl.BlockSpec((batch_tile, state_dim), lambda i: (i, 0)),
                pl.BlockSpec((batch_tile, action_dim), lambda i: (i, 0)),
                full((state_dim, H1)),    # w1 (state rows)
                full((action_dim, H1)),   # w1 (action rows)
                full((1, H1)),            # b1
                full((H1, H2)),           # w2
                full((1, H2)),            # b2
                full((1, H2)),            # wo^T
                full((1, 1)),             # bo
            ],
            # Lane-dense output slab: each grid step writes a full 128-wide row
            # segment (unmasked vector stores).
            out_specs=pl.BlockSpec((1, batch_tile), lambda i: (0, i)),
        ),
        compiler_params=pltpu.CompilerParams(
            dimension_semantics=("parallel",)),
    )(state, action, w1s, w1a, params["b1"], params["w2"], params["b2"],
      wo_t, params["bo"])

    # Back to (B, 1), dropping padded rows.
    return out[0, :B][:, None]


def init_critic_q_params(key, in_dim, layers_sizes, init_w=0.003):
    """Deterministic init matching PyTorch semantics:
    hidden Linear layers: U(-1/sqrt(fan_in), 1/sqrt(fan_in)) (default nn.Linear)
    output Linear layer:  U(-init_w, init_w)                 (init_layer_uniform)
    Weights stored as (in_features, out_features)."""
    params = {}
    d = in_dim
    ks = jax.random.split(key, 2 * len(layers_sizes) + 2)
    for idx, size in enumerate(layers_sizes):
        bound = 1.0 / jnp.sqrt(d)
        params[f"w{idx + 1}"] = jax.random.uniform(
            ks[2 * idx], (d, size), jnp.float32, -bound, bound)
        params[f"b{idx + 1}"] = jax.random.uniform(
            ks[2 * idx + 1], (1, size), jnp.float32, -bound, bound)
        d = size
    params["wo"] = jax.random.uniform(
        ks[-2], (d, 1), jnp.float32, -init_w, init_w)
    params["bo"] = jax.random.uniform(
        ks[-1], (1, 1), jnp.float32, -init_w, init_w)
    return params


def critic_q_ref(state, action, params):
    """Pure-JAX reference of the same forward pass."""
    x = jnp.concatenate([state, action], axis=-1)
    h = jnp.maximum(x @ params["w1"] + params["b1"], 0.0)
    h = jnp.maximum(h @ params["w2"] + params["b2"], 0.0)
    return h @ params["wo"] + params["bo"]


if __name__ == "__main__":
    key = jax.random.PRNGKey(0)
    k_state, k_action, k_params, k_big = jax.random.split(key, 4)

    # Small shapes consistent with the module:
    # state_dim=12, action_dim=4 -> in_dim=16; layers_data=[(32, ReLU), (32, ReLU)]
    batch, state_dim, action_dim = 8, 12, 4
    hidden_sizes = [32, 32]

    state = jax.random.normal(k_state, (batch, state_dim), jnp.float32)
    action = jax.random.normal(k_action, (batch, action_dim), jnp.float32)
    params = init_critic_q_params(k_params, state_dim + action_dim,
                                  hidden_sizes)

    q = jax.block_until_ready(critic_q_forward(state, action, params))
    q_ref = critic_q_ref(state, action, params)
    assert q.shape == (batch, 1), q.shape
    assert jnp.allclose(q, q_ref, atol=1e-5, rtol=1e-5), (
        "Pallas output mismatch vs JAX reference (small batch)")

    # Larger, non-multiple batch: exercises padding + multi-tile grid
    # (>= 2 grid points so the 'parallel' axis can shard across TCs on v7x).
    B2 = 300
    ks2, ka2 = jax.random.split(k_big)
    state2 = jax.random.normal(ks2, (B2, state_dim), jnp.float32)
    action2 = jax.random.normal(ka2, (B2, action_dim), jnp.float32)
    q2 = jax.block_until_ready(critic_q_forward(state2, action2, params))
    q2_ref = critic_q_ref(state2, action2, params)
    assert q2.shape == (B2, 1), q2.shape
    assert jnp.allclose(q2, q2_ref, atol=1e-5, rtol=1e-5), (
        "Pallas output mismatch vs JAX reference (padded batch)")

    print("KERNEL_OK")
</pallas_src>

<mosaic_0001>
module attributes {stable_mosaic.version = 11 : i64} {
  func.func @critic_q_kernel(%arg0: i32, %arg1: memref<128x12xf32, #tpu.memory_space<vmem>>, %arg2: memref<128x4xf32, #tpu.memory_space<vmem>>, %arg3: memref<12x32xf32, #tpu.memory_space<vmem>>, %arg4: memref<4x32xf32, #tpu.memory_space<vmem>>, %arg5: memref<1x32xf32, #tpu.memory_space<vmem>>, %arg6: memref<32x32xf32, #tpu.memory_space<vmem>>, %arg7: memref<1x32xf32, #tpu.memory_space<vmem>>, %arg8: memref<1x32xf32, #tpu.memory_space<vmem>>, %arg9: memref<1x1xf32, #tpu.memory_space<vmem>>, %arg10: memref<1x128xf32, #tpu.memory_space<vmem>>) attributes {dimension_semantics = [#tpu.dimension_semantics<parallel>], iteration_bounds = array<i64: 1>, scalar_prefetch = 0 : i64, scratch_operands = 0 : i64, tpu.core_type = #tpu.core_type<tc>, window_params = [{transform_indices = @transform_0, window_bounds = array<i64: 128, 12>}, {transform_indices = @transform_1, window_bounds = array<i64: 128, 4>}, {pipeline_mode = #tpu.pipeline_mode<synchronous>, transform_indices = @transform_2, window_bounds = array<i64: 12, 32>}, {pipeline_mode = #tpu.pipeline_mode<synchronous>, transform_indices = @transform_3, window_bounds = array<i64: 4, 32>}, {pipeline_mode = #tpu.pipeline_mode<synchronous>, transform_indices = @transform_4, window_bounds = array<i64: 1, 32>}, {pipeline_mode = #tpu.pipeline_mode<synchronous>, transform_indices = @transform_5, window_bounds = array<i64: 32, 32>}, {pipeline_mode = #tpu.pipeline_mode<synchronous>, transform_indices = @transform_6, window_bounds = array<i64: 1, 32>}, {pipeline_mode = #tpu.pipeline_mode<synchronous>, transform_indices = @transform_7, window_bounds = array<i64: 1, 32>}, {pipeline_mode = #tpu.pipeline_mode<synchronous>, transform_indices = @transform_8, window_bounds = array<i64: 1, 1>}, {transform_indices = @transform_9, window_bounds = array<i64: 1, 128>}]} {
    %c0 = arith.constant 0 : index
    %c0_0 = arith.constant 0 : index
    %0 = vector.load %arg1[%c0, %c0_0] : memref<128x12xf32, #tpu.memory_space<vmem>>, vector<128x12xf32>
    %c0_1 = arith.constant 0 : index
    %c0_2 = arith.constant 0 : index
    %1 = vector.load %arg3[%c0_1, %c0_2] : memref<12x32xf32, #tpu.memory_space<vmem>>, vector<12x32xf32>
    %cst = arith.constant dense<0.000000e+00> : vector<128x32xf32>
    %2 = tpu.matmul %0, %1, %cst {dimension_numbers = #tpu.dot_dimension_numbers<[1], [0], [0], [1], [0, 0, 1, 1], [], []>} : vector<128x12xf32>, vector<12x32xf32>, vector<128x32xf32> -> vector<128x32xf32>
    %c0_3 = arith.constant 0 : index
    %c0_4 = arith.constant 0 : index
    %3 = vector.load %arg2[%c0_3, %c0_4] : memref<128x4xf32, #tpu.memory_space<vmem>>, vector<128x4xf32>
    %c0_5 = arith.constant 0 : index
    %c0_6 = arith.constant 0 : index
    %4 = vector.load %arg4[%c0_5, %c0_6] : memref<4x32xf32, #tpu.memory_space<vmem>>, vector<4x32xf32>
    %cst_7 = arith.constant dense<0.000000e+00> : vector<128x32xf32>
    %5 = tpu.matmul %3, %4, %cst_7 {dimension_numbers = #tpu.dot_dimension_numbers<[1], [0], [0], [1], [0, 0, 1, 1], [], []>} : vector<128x4xf32>, vector<4x32xf32>, vector<128x32xf32> -> vector<128x32xf32>
    %6 = arith.addf %2, %5 : vector<128x32xf32>
    %c0_8 = arith.constant 0 : index
    %c0_9 = arith.constant 0 : index
    %7 = vector.load %arg5[%c0_8, %c0_9] : memref<1x32xf32, #tpu.memory_space<vmem>>, vector<1x32xf32>
    %8 = vector.broadcast %7 : vector<1x32xf32> to vector<128x32xf32>
    %9 = arith.addf %6, %8 : vector<128x32xf32>
    %cst_10 = arith.constant 0.000000e+00 : f32
    %10 = vector.broadcast %cst_10 : f32 to vector<128x32xf32>
    %11 = arith.maximumf %9, %10 : vector<128x32xf32>
    %c0_11 = arith.constant 0 : index
    %c0_12 = arith.constant 0 : index
    %12 = vector.load %arg6[%c0_11, %c0_12] : memref<32x32xf32, #tpu.memory_space<vmem>>, vector<32x32xf32>
    %cst_13 = arith.constant dense<0.000000e+00> : vector<128x32xf32>
    %13 = tpu.matmul %11, %12, %cst_13 {dimension_numbers = #tpu.dot_dimension_numbers<[1], [0], [0], [1], [0, 0, 1, 1], [], []>} : vector<128x32xf32>, vector<32x32xf32>, vector<128x32xf32> -> vector<128x32xf32>
    %c0_14 = arith.constant 0 : index
    %c0_15 = arith.constant 0 : index
    %14 = vector.load %arg7[%c0_14, %c0_15] : memref<1x32xf32, #tpu.memory_space<vmem>>, vector<1x32xf32>
    %15 = vector.broadcast %14 : vector<1x32xf32> to vector<128x32xf32>
    %16 = arith.addf %13, %15 : vector<128x32xf32>
    %cst_16 = arith.constant 0.000000e+00 : f32
    %17 = vector.broadcast %cst_16 : f32 to vector<128x32xf32>
    %18 = arith.maximumf %16, %17 : vector<128x32xf32>
    %c0_17 = arith.constant 0 : index
    %c0_18 = arith.constant 0 : index
    %19 = vector.load %arg8[%c0_17, %c0_18] : memref<1x32xf32, #tpu.memory_space<vmem>>, vector<1x32xf32>
    %cst_19 = arith.constant dense<0.000000e+00> : vector<1x128xf32>
    %20 = tpu.matmul %19, %18, %cst_19 {dimension_numbers = #tpu.dot_dimension_numbers<[1], [1], [0], [0], [0, 0, 1, 0], [], []>} : vector<1x32xf32>, vector<128x32xf32>, vector<1x128xf32> -> vector<1x128xf32>
    %c0_20 = arith.constant 0 : index
    %c0_21 = arith.constant 0 : index
    %21 = vector.load %arg9[%c0_20, %c0_21] : memref<1x1xf32, #tpu.memory_space<vmem>>, vector<1x1xf32>
    %22 = vector.broadcast %21 : vector<1x1xf32> to vector<1x128xf32>
    %23 = arith.addf %20, %22 : vector<1x128xf32>
    %c0_22 = arith.constant 0 : index
    %c0_23 = arith.constant 0 : index
    %24 = vector.load %arg10[%c0_22, %c0_23] : memref<1x128xf32, #tpu.memory_space<vmem>>, vector<1x128xf32>
    tpu.vector_store %arg10[%c0_22, %c0_23], %23 {strides = array<i32>} : memref<1x128xf32, #tpu.memory_space<vmem>>, vector<1x128xf32>,
    return
  }
  func.func @transform_0(%arg0: i32) -> (i32, i32) {
    %c0_i32 = arith.constant 0 : i32
    %c0_i32_0 = arith.constant 0 : i32
    return %arg0, %c0_i32 : i32, i32
  }
  func.func @transform_1(%arg0: i32) -> (i32, i32) {
    %c0_i32 = arith.constant 0 : i32
    %c0_i32_0 = arith.constant 0 : i32
    return %arg0, %c0_i32 : i32, i32
  }
  func.func @transform_2(%arg0: i32) -> (i32, i32) {
    %c0_i32 = arith.constant 0 : i32
    %c0_i32_0 = arith.constant 0 : i32
    %c0_i32_1 = arith.constant 0 : i32
    return %c0_i32, %c0_i32_0 : i32, i32
  }
  func.func @transform_3(%arg0: i32) -> (i32, i32) {
    %c0_i32 = arith.constant 0 : i32
    %c0_i32_0 = arith.constant 0 : i32
    %c0_i32_1 = arith.constant 0 : i32
    return %c0_i32, %c0_i32_0 : i32, i32
  }
  func.func @transform_4(%arg0: i32) -> (i32, i32) {
    %c0_i32 = arith.constant 0 : i32
    %c0_i32_0 = arith.constant 0 : i32
    %c0_i32_1 = arith.constant 0 : i32
    return %c0_i32, %c0_i32_0 : i32, i32
  }
  func.func @transform_5(%arg0: i32) -> (i32, i32) {
    %c0_i32 = arith.constant 0 : i32
    %c0_i32_0 = arith.constant 0 : i32
    %c0_i32_1 = arith.constant 0 : i32
    return %c0_i32, %c0_i32_0 : i32, i32
  }
  func.func @transform_6(%arg0: i32) -> (i32, i32) {
    %c0_i32 = arith.constant 0 : i32
    %c0_i32_0 = arith.constant 0 : i32
    %c0_i32_1 = arith.constant 0 : i32
    return %c0_i32, %c0_i32_0 : i32, i32
  }
  func.func @transform_7(%arg0: i32) -> (i32, i32) {
    %c0_i32 = arith.constant 0 : i32
    %c0_i32_0 = arith.constant 0 : i32
    %c0_i32_1 = arith.constant 0 : i32
    return %c0_i32, %c0_i32_0 : i32, i32
  }
  func.func @transform_8(%arg0: i32) -> (i32, i32) {
    %c0_i32 = arith.constant 0 : i32
    %c0_i32_0 = arith.constant 0 : i32
    %c0_i32_1 = arith.constant 0 : i32
    return %c0_i32, %c0_i32_0 : i32, i32
  }
  func.func @transform_9(%arg0: i32) -> (i32, i32) {
    %c0_i32 = arith.constant 0 : i32
    %c0_i32_0 = arith.constant 0 : i32
    return %c0_i32, %arg0 : i32, i32
  }
}

</mosaic_0001>

<bundles_post_ra>
// kernel: critic_q_forward.1
= control target key start
LH: loop header
LB: loop body
LE: loop exit
PB: predicated region body
PF: predicated region fallthrough
CT: control target
= control target key end

     0   :  { %vm118_vm0 = vcmask 1043456   ;;  %vm69_vm1 = vcmask 31744   ;;  %vm1191_vm2 = vmmov 1   ;;  %vm267_vm4 = vcmask 97280   ;;  %s1457_s3 = inlined_call_operand.vmem [shape: f32[4,32], index: 3, kind: input, shape index: {}]   ;;  %s1458_s1 = inlined_call_operand.vmem [shape: f32[128,4], index: 1, kind: input, shape index: {}]   ;;  %s1459_s2 = inlined_call_operand.vmem [shape: f32[12,32], index: 2, kind: input, shape index: {}]   ;;  %s1460_s5 = inlined_call_operand.vmem [shape: f32[32,32], index: 5, kind: input, shape index: {}]   ;;  %s1461_s0 = inlined_call_operand.vmem [shape: f32[128,12], index: 0, kind: input, shape index: {}]   ;;  %s1462_s4 = inlined_call_operand.vmem [shape: f32[1,32], index: 4, kind: input, shape index: {}]   ;;  %s1463_s8 = inlined_call_operand.<no memory space> [shape: f32[1,1], index: 8, kind: input, shape index: {}]   ;;  %s1464_s6 = inlined_call_operand.vmem [shape: f32[1,32], index: 6, kind: input, shape index: {}]   ;;  %s1465_s7 = inlined_call_operand.vmem [shape: f32[1,32], index: 7, kind: input, shape index: {}]   ;;  %s1466_s9 = inlined_call_operand.vmem [shape: f32[1,128], index: 9, kind: output, shape index: {}]  }
   0x1   :  { %v68_v0 = vld [vmem:[%s1457_s3] sm:$0xf]  ;;  %v53_v2 = vld [vmem:[%s1458_s1 + $0x8] sm:$0xff]  ;;  %vm1124_vm3 = vmpackc.low %vm118_vm0, %vm1191_vm2  ;;  %vm514_vm5 = vcmask 261120   ;;  %vm1193_vm6 = vmmov 0  }
   0x2   :  { %v52_v1 = vld [vmem:[%s1458_s1] sm:$0xff]  ;;  %1002 = vmatprep.subr.msk.mxu0 %vm118_vm0, %v68_v0  ;;  %v51_v4 = vld [vmem:[%s1459_s2 + $0x8] sm:$0xf]  ;;  %v54_v6 = vld [vmem:[%s1458_s1 + $0x10] sm:$0xff] }
   0x3   :  { %1004 = vmatprep.mubr.msk.f32.mxu0 %vm69_vm1, %v52_v1  ;;  %v50_v3 = vld [vmem:[%s1459_s2] sm:$0xff]  ;;  %1003 = vmatpush3.msk.msra.mxu0 %vm118_vm0, %v68_v0  ;;  %v55_v7 = vld [vmem:[%s1458_s1 + $0x18] sm:$0xff]  ;;  %v57_v9 = vld [vmem:[%s1458_s1 + $0x28] sm:$0xff] }
   0x4   :  { %v1123_v5 = vpack.c.bf16 %v51_v4, %v50_v3  ;;  %1005 = vmatmul.mubr.msk.f32.vlgmr.msra.gmra.mrb[0].mxu0 %vm69_vm1, %v53_v2  ;;  %v56_v8 = vld [vmem:[%s1458_s1 + $0x20] sm:$0xff]  ;;  %v58_v10 = vld [vmem:[%s1458_s1 + $0x30] sm:$0xff]  ;;  %v59_v11 = vld [vmem:[%s1458_s1 + $0x38] sm:$0xff] }
   0x5   :  { %1007 = vmatprep.mubr.msk.f32.mxu0 %vm69_vm1, %v54_v6  ;;  %v503_v12 = vld [vmem:[%s1460_s5] sm:$0xff]  ;;  %v504_v13 = vld [vmem:[%s1460_s5 + $0x8] sm:$0xff]  ;;  %v62_v17 = vld [vmem:[%s1458_s1 + $0x50] sm:$0xff] }
   0x6   :  { %1125 = vmatprep.subr.msk.bf16.mxu0 %vm1124_vm3, %v1123_v5  ;;  %v60_v14 = vld [vmem:[%s1458_s1 + $0x40] sm:$0xff]  ;;  %v1129_v15 = vpack.c.bf16 %v504_v13, %v503_v12  ;;  %v61_v16 = vld [vmem:[%s1458_s1 + $0x48] sm:$0xff]  ;;  %v63_v18 = vld [vmem:[%s1458_s1 + $0x58] sm:$0xff] }
   0x7   :  { %1128 = vmatpush3.bf16.msk.msra.mxu0 %vm1124_vm3, %v1123_v5  ;;  %v64_v19 = vld [vmem:[%s1458_s1 + $0x60] sm:$0xff]  ;;  %v65_v20 = vld [vmem:[%s1458_s1 + $0x68] sm:$0xff]  ;;  %v66_v21 = vld [vmem:[%s1458_s1 + $0x70] sm:$0xff] }
   0x8   :  { %1008 = vmatmul.mubr.msk.f32.gmra.mrb[2].mxu0 %vm69_vm1, %v55_v7  ;;  %1130 = vmatprep.subr.bf16.mxu1 %v1129_v15  ;;  %v67_v22 = vld [vmem:[%s1458_s1 + $0x78] sm:$0xff]  ;;  %v34_v23 = vld [vmem:[%s1461_s0] sm:$0xff]  ;;  %v35_v24 = vld [vmem:[%s1461_s0 + $0x8] sm:$0xff] }
   0x9   :  { %1010 = vmatprep.mubr.msk.f32.mxu0 %vm69_vm1, %v56_v8  ;;  %1132 = vmatpush3.bf16.msra.mxu1 %v1129_v15  ;;  %v36_v25 = vld [vmem:[%s1461_s0 + $0x10] sm:$0xff]  ;;  %v37_v26 = vld [vmem:[%s1461_s0 + $0x18] sm:$0xff]  ;;  %v38_v27 = vld [vmem:[%s1461_s0 + $0x20] sm:$0xff] }
   0xa   :  { %v39_v28 = vld [vmem:[%s1461_s0 + $0x28] sm:$0xff]  ;;  %v40_v29 = vld [vmem:[%s1461_s0 + $0x30] sm:$0xff]  ;;  %v41_v30 = vld [vmem:[%s1461_s0 + $0x38] sm:$0xff] }
   0xb   :  { %v42_v31 = vld [vmem:[%s1461_s0 + $0x40] sm:$0xff]  ;;  %v43_v32 = vld [vmem:[%s1461_s0 + $0x48] sm:$0xff]  ;;  %v44_v33 = vld [vmem:[%s1461_s0 + $0x50] sm:$0xff] }
   0xc   :  { %1011 = vmatmul.mubr.msk.f32.gmra.mrb[4].mxu0 %vm69_vm1, %v57_v9  ;;  %v45_v34 = vld [vmem:[%s1461_s0 + $0x58] sm:$0xff]  ;;  %v46_v35 = vld [vmem:[%s1461_s0 + $0x60] sm:$0xff]  ;;  %v47_v36 = vld [vmem:[%s1461_s0 + $0x68] sm:$0xff] }
   0xd   :  { %1013 = vmatprep.mubr.msk.f32.mxu0 %vm69_vm1, %v58_v10  ;;  %v48_v37 = vld [vmem:[%s1461_s0 + $0x70] sm:$0xff]  ;;  %v49_v38 = vld [vmem:[%s1461_s0 + $0x78] sm:$0xff]  ;;  %v895_v42 = vld [vmem:[%s1462_s4] ss:$0 sm:$0xff] }
   0xe   :  { %v505_v39 = vld [vmem:[%s1460_s5 + $0x10] sm:$0xff]  ;;  %v506_v40 = vld [vmem:[%s1460_s5 + $0x18] sm:$0xff]  ;;  %vm1423_vm7 = vmpackc.low %vm514_vm5, %vm514_vm5 }
   0xf   :  { %v1133_v41 = vpack.c.bf16 %v506_v40, %v505_v39 }
  0x10   :  { %1014 = vmatmul.mubr.msk.f32.gmra.mrb[6].mxu0 %vm69_vm1, %v59_v11 }
  0x11   :  { %1016 = vmatprep.mubr.msk.f32.mxu0 %vm69_vm1, %v60_v14  ;;  %1134 = vmatprep.subr.bf16.mxu1 %v1133_v41 }
  0x12   :  { %1136 = vmatpush3.bf16.msra.mxu1 %v1133_v41 }
  0x14   :  { %1017 = vmatmul.mubr.msk.f32.gmra.mrb[8].mxu0 %vm69_vm1, %v61_v16 }
  0x15   :  { %1019 = vmatprep.mubr.msk.f32.mxu0 %vm69_vm1, %v62_v17 }
  0x18   :  { %1020 = vmatmul.mubr.msk.f32.gmra.mrb[10].mxu0 %vm69_vm1, %v63_v18 }
  0x19   :  { %1022 = vmatprep.mubr.msk.f32.mxu0 %vm69_vm1, %v64_v19 }
  0x1c   :  { %1023 = vmatmul.mubr.msk.f32.gmra.mrb[12].mxu0 %vm69_vm1, %v65_v20 }
  0x1d   :  { %1025 = vmatprep.mubr.msk.f32.mxu0 %vm69_vm1, %v66_v21 }
  0x20   :  { %1026 = vmatmul.mubr.msk.f32.gmra.mrb[14].mxu0 %vm69_vm1, %v67_v22 }
  0x21   :  { %1032 = vmatprep.mubr.msk.f32.mxu0 %vm267_vm4, %v34_v23 }
  0x24   :  { %1033 = vmatmul.mubr.msk.f32.vlgmr.msra.gmra.mrb[0].mxu0 %vm267_vm4, %v35_v24 }
  0x25   :  { %1035 = vmatprep.mubr.msk.f32.mxu0 %vm267_vm4, %v36_v25 }
  0x28   :  { %1036 = vmatmul.mubr.msk.f32.gmra.mrb[2].mxu0 %vm267_vm4, %v37_v26 }
  0x29   :  { %1038 = vmatprep.mubr.msk.f32.mxu0 %vm267_vm4, %v38_v27  ;;  %v1192_v27 = vmov 0.0|0.0  }
  0x2a   :  { %1137 = vmatprep.subr.bf16.mxu1 %v1192_v27 }
  0x2c   :  { %1039 = vmatmul.mubr.msk.f32.gmra.mrb[4].mxu0 %vm267_vm4, %v39_v28  ;;  %v1194_v28 = vmov 0.0  }
  0x2d   :  { %1041 = vmatprep.mubr.msk.f32.mxu0 %vm267_vm4, %v40_v29  ;;  %v1195_v29 = vmov 0  }
  0x2e   :  { %1190 = vset.pattern.permute.xlu0 %v1195_v29 }
  0x30   :  { %1042 = vmatmul.mubr.msk.f32.gmra.mrb[6].mxu0 %vm267_vm4, %v41_v30  ;;  %v14_v30 = vstv %s1463_s8 }
  0x31   :  { %1044 = vmatprep.mubr.msk.f32.mxu0 %vm267_vm4, %v42_v31  ;;  %15 = vst [vmem:[#allocation2] sm:$0x1] %v14_v30 }
  0x34   :  { %1045 = vmatmul.mubr.msk.f32.gmra.mrb[8].mxu0 %vm267_vm4, %v43_v32  ;;  %v896_v32 = vld [vmem:[%s1464_s6] ss:$0 sm:$0xff] }
  0x35   :  { %1047 = vmatprep.mubr.msk.f32.mxu0 %vm267_vm4, %v44_v33 }
  0x38   :  { %1048 = vmatmul.mubr.msk.f32.gmra.mrb[10].mxu0 %vm267_vm4, %v45_v34  ;;  %v725_v31 = vld [vmem:[#allocation2] sm:$0x1] }
  0x39   :  { %1050 = vmatprep.mubr.msk.f32.mxu0 %vm267_vm4, %v46_v35  ;;  %728 = vperm.xlu0 %1190, %v725_v31  }
  0x3c   :  { %1051 = vmatmul.mubr.msk.f32.gmra.mrb[12].mxu0 %vm267_vm4, %v47_v36 }
  0x3d   :  { %1053 = vmatprep.mubr.msk.f32.mxu0 %vm267_vm4, %v48_v37 }
  0x40   :  { %1054 = vmatmul.mubr.msk.f32.gmra.mrb[14].mxu0 %vm267_vm4, %v49_v38 }
  0xb8   :  { %v729_v31 = vpop.permute.xlu0 %728 }
  0xf7   :  { %v1034_v43 = vpop.f32.mrb[0].mxu0 }
  0xf8   :  { %v472_v44 = vadd.f32 %v1034_v43, %v895_v42  ;;  %v385_v45 = vpop.f32.mrb[1].mxu0 }
  0xf9   :  { %v471_v46 = vadd.f32 %v895_v42, %v385_v45 }
  0xfa   :  { %v488_v49 = vmax.f32 %v472_v44, 0.0 }
  0xfb   :  { %v487_v47 = vmax.f32 %v471_v46, 0.0  ;;  %v1037_v48 = vpop.f32.mrb[2].mxu0 }
  0xfc   :  { %v474_v50 = vadd.f32 %v1037_v48, %v895_v42  ;;  %v395_v51 = vpop.f32.mrb[3].mxu0 }
  0xfd   :  { %v473_v52 = vadd.f32 %v895_v42, %v395_v51  ;;  %1064 = vmatprep.mubr.msk.f32.mxu1 %vm514_vm5, %v487_v47 }
  0xfe   :  { %1065 = vmatmul.mubr.msk.f32.vlgmr.msra.gmra.mrb[0].mxu1 %vm514_vm5, %v488_v49  ;;  %v490_v55 = vmax.f32 %v474_v50, 0.0 }
  0xff   :  { %v489_v53 = vmax.f32 %v473_v52, 0.0  ;;  %v1040_v54 = vpop.f32.mrb[4].mxu0 }
 0x100   :  { %v476_v56 = vadd.f32 %v1040_v54, %v895_v42  ;;  %v405_v57 = vpop.f32.mrb[5].mxu0 }
 0x101   :  { %v475_v58 = vadd.f32 %v895_v42, %v405_v57  ;;  %1067 = vmatprep.mubr.msk.f32.mxu1 %vm514_vm5, %v489_v53 }
 0x102   :  { %1068 = vmatmul.mubr.msk.f32.gmra.mrb[2].mxu1 %vm514_vm5, %v490_v55  ;;  %v492_v61 = vmax.f32 %v476_v56, 0.0 }
 0x103   :  { %v491_v59 = vmax.f32 %v475_v58, 0.0  ;;  %v1043_v60 = vpop.f32.mrb[6].mxu0 }
 0x104   :  { %v478_v62 = vadd.f32 %v1043_v60, %v895_v42  ;;  %v415_v63 = vpop.f32.mrb[7].mxu0 }
 0x105   :  { %v477_v0 = vadd.f32 %v895_v42, %v415_v63  ;;  %1070 = vmatprep.mubr.msk.f32.mxu1 %vm514_vm5, %v491_v59 }
 0x106   :  { %1071 = vmatmul.mubr.msk.f32.gmra.mrb[4].mxu1 %vm514_vm5, %v492_v61  ;;  %v494_v3 = vmax.f32 %v478_v62, 0.0 }
 0x107   :  { %v493_v1 = vmax.f32 %v477_v0, 0.0  ;;  %v1046_v2 = vpop.f32.mrb[8].mxu0 }
 0x108   :  { %v480_v4 = vadd.f32 %v1046_v2, %v895_v42  ;;  %v425_v5 = vpop.f32.mrb[9].mxu0 }
 0x109   :  { %v479_v6 = vadd.f32 %v895_v42, %v425_v5  ;;  %1073 = vmatprep.mubr.msk.f32.mxu1 %vm514_vm5, %v493_v1 }
 0x10a   :  { %1074 = vmatmul.mubr.msk.f32.gmra.mrb[6].mxu1 %vm514_vm5, %v494_v3  ;;  %v496_v9 = vmax.f32 %v480_v4, 0.0 }
 0x10b   :  { %v495_v7 = vmax.f32 %v479_v6, 0.0  ;;  %v1049_v8 = vpop.f32.mrb[10].mxu0 }
 0x10c   :  { %v482_v10 = vadd.f32 %v1049_v8, %v895_v42  ;;  %v435_v11 = vpop.f32.mrb[11].mxu0 }
 0x10d   :  { %v481_v12 = vadd.f32 %v895_v42, %v435_v11  ;;  %1076 = vmatprep.mubr.msk.f32.mxu1 %vm514_vm5, %v495_v7 }
 0x10e   :  { %1077 = vmatmul.mubr.msk.f32.gmra.mrb[8].mxu1 %vm514_vm5, %v496_v9  ;;  %v498_v15 = vmax.f32 %v482_v10, 0.0 }
 0x10f   :  { %v497_v13 = vmax.f32 %v481_v12, 0.0  ;;  %v1052_v14 = vpop.f32.mrb[12].mxu0 }
 0x110   :  { %v484_v16 = vadd.f32 %v1052_v14, %v895_v42  ;;  %v445_v17 = vpop.f32.mrb[13].mxu0 }
 0x111   :  { %v483_v18 = vadd.f32 %v895_v42, %v445_v17  ;;  %1079 = vmatprep.mubr.msk.f32.mxu1 %vm514_vm5, %v497_v13 }
 0x112   :  { %1080 = vmatmul.mubr.msk.f32.gmra.mrb[10].mxu1 %vm514_vm5, %v498_v15  ;;  %v500_v21 = vmax.f32 %v484_v16, 0.0 }
 0x113   :  { %v499_v19 = vmax.f32 %v483_v18, 0.0  ;;  %v1055_v20 = vpop.f32.mrb[14].mxu0 }
 0x114   :  { %v486_v22 = vadd.f32 %v1055_v20, %v895_v42  ;;  %v455_v23 = vpop.f32.mrb[15].mxu0 }
 0x115   :  { %v485_v24 = vadd.f32 %v895_v42, %v455_v23  ;;  %1082 = vmatprep.mubr.msk.f32.mxu1 %vm514_vm5, %v499_v19 }
 0x116   :  { %1083 = vmatmul.mubr.msk.f32.gmra.mrb[12].mxu1 %vm514_vm5, %v500_v21  ;;  %v502_v26 = vmax.f32 %v486_v22, 0.0 }
 0x117   :  { %v501_v25 = vmax.f32 %v485_v24, 0.0 }
 0x119   :  { %1085 = vmatprep.mubr.msk.f32.mxu1 %vm514_vm5, %v501_v25 }
 0x11a   :  { %1086 = vmatmul.mubr.msk.f32.gmra.mrb[14].mxu1 %vm514_vm5, %v502_v26  ;;  %v724_v26 = vld [vmem:[%s1465_s7] sm:$0x1] }
 0x11b   :  { %1120 = vmatprep.mubr.msk.f32.mxu1 %vm1193_vm6, %v1194_v28  ;;  %v731_v28 = vlaneseq }
 0x11d   :  { %v732_v29 = vshrl.u32 %v731_v28, 7 }
 0x11f   :  { %v733_v30 = vsub.s32 0, %v732_v29 }
 0x1d1   :  { %v1066_v33 = vpop.f32.mrb[0].mxu1 }
 0x1d2   :  { %v635_v34 = vadd.f32 %v1066_v33, %v896_v32  ;;  %v629_v35 = vpop.f32.mrb[1].mxu1 }
 0x1d3   :  { %v630_v36 = vadd.f32 %v896_v32, %v629_v35 }
 0x1d4   :  { %v709_v37 = vmax.f32 %v635_v34, 0.0 }
 0x1d5   :  { %v708_v38 = vmax.f32 %v630_v36, 0.0  ;;  %v1069_v39 = vpop.f32.mrb[2].mxu1 }
 0x1d6   :  { %v645_v40 = vadd.f32 %v1069_v39, %v896_v32  ;;  %v639_v41 = vpop.f32.mrb[3].mxu1 }
 0x1d7   :  { %v1138_v43 = vpack.c.bf16 %v709_v37, %v708_v38  ;;  %v640_v44 = vadd.f32 %v896_v32, %v639_v41 }
 0x1d8   :  { %v711_v45 = vmax.f32 %v645_v40, 0.0 }
 0x1d9   :  { %v710_v46 = vmax.f32 %v640_v44, 0.0  ;;  %v1072_v47 = vpop.f32.mrb[4].mxu1  ;;  %1140 = vmatpush3.bf16.xpose.msk.msra.mxu1 %vm1423_vm7, %v1138_v43 }
 0x1da   :  { %v655_v48 = vadd.f32 %v1072_v47, %v896_v32  ;;  %v649_v49 = vpop.f32.mrb[5].mxu1  ;;  %1141 = vmatprep.subr.bf16.mxu1 %v1192_v27 }
 0x1db   :  { %v1142_v50 = vpack.c.bf16 %v711_v45, %v710_v46  ;;  %v650_v51 = vadd.f32 %v896_v32, %v649_v49 }
 0x1dc   :  { %v713_v52 = vmax.f32 %v655_v48, 0.0 }
 0x1dd   :  { %v712_v53 = vmax.f32 %v650_v51, 0.0  ;;  %v1075_v54 = vpop.f32.mrb[6].mxu1 }
 0x1de   :  { %v665_v55 = vadd.f32 %v1075_v54, %v896_v32  ;;  %v659_v56 = vpop.f32.mrb[7].mxu1 }
 0x1df   :  { %v1146_v57 = vpack.c.bf16 %v713_v52, %v712_v53  ;;  %v660_v58 = vadd.f32 %v896_v32, %v659_v56 }
 0x1e0   :  { %v715_v59 = vmax.f32 %v665_v55, 0.0 }
 0x1e1   :  { %v714_v60 = vmax.f32 %v660_v58, 0.0  ;;  %v1078_v61 = vpop.f32.mrb[8].mxu1  ;;  %1144 = vmatpush3.bf16.xpose.msk.msra.mxu1 %vm1423_vm7, %v1142_v50 }
 0x1e2   :  { %v675_v62 = vadd.f32 %v1078_v61, %v896_v32  ;;  %v669_v63 = vpop.f32.mrb[9].mxu1  ;;  %1145 = vmatprep.subr.bf16.mxu1 %v1192_v27 }
 0x1e3   :  { %v1150_v0 = vpack.c.bf16 %v715_v59, %v714_v60  ;;  %v670_v1 = vadd.f32 %v896_v32, %v669_v63 }
 0x1e4   :  { %v717_v2 = vmax.f32 %v675_v62, 0.0 }
 0x1e5   :  { %v716_v3 = vmax.f32 %v670_v1, 0.0  ;;  %v1081_v4 = vpop.f32.mrb[10].mxu1 }
 0x1e6   :  { %v685_v5 = vadd.f32 %v1081_v4, %v896_v32  ;;  %v679_v6 = vpop.f32.mrb[11].mxu1 }
 0x1e7   :  { %v1154_v7 = vpack.c.bf16 %v717_v2, %v716_v3  ;;  %v680_v8 = vadd.f32 %v896_v32, %v679_v6 }
 0x1e8   :  { %v719_v9 = vmax.f32 %v685_v5, 0.0 }
 0x1e9   :  { %v718_v10 = vmax.f32 %v680_v8, 0.0  ;;  %v1084_v11 = vpop.f32.mrb[12].mxu1  ;;  %1148 = vmatpush3.bf16.xpose.msk.msra.mxu1 %vm1423_vm7, %v1146_v57 }
 0x1ea   :  { %v695_v12 = vadd.f32 %v1084_v11, %v896_v32  ;;  %v689_v13 = vpop.f32.mrb[13].mxu1  ;;  %1149 = vmatprep.subr.bf16.mxu1 %v1192_v27 }
 0x1eb   :  { %v1158_v14 = vpack.c.bf16 %v719_v9, %v718_v10  ;;  %v690_v15 = vadd.f32 %v896_v32, %v689_v13 }
 0x1ec   :  { %v721_v16 = vmax.f32 %v695_v12, 0.0 }
 0x1ed   :  { %v720_v17 = vmax.f32 %v690_v15, 0.0  ;;  %v1087_v18 = vpop.f32.mrb[14].mxu1 }
 0x1ee   :  { %v705_v19 = vadd.f32 %v1087_v18, %v896_v32  ;;  %v699_v20 = vpop.f32.mrb[15].mxu1 }
 0x1ef   :  { %v1162_v21 = vpack.c.bf16 %v721_v16, %v720_v17  ;;  %v700_v22 = vadd.f32 %v896_v32, %v699_v20  ;;  %v734_v32 = vrot.slane %v729_v31, %v733_v30 }
 0x1f0   :  { %v723_v23 = vmax.f32 %v705_v19, 0.0 }
 0x1f1   :  { %v722_v24 = vmax.f32 %v700_v22, 0.0  ;;  %1152 = vmatpush3.bf16.xpose.msk.msra.mxu1 %vm1423_vm7, %v1150_v0 }
 0x1f2   :  { %1153 = vmatprep.subr.bf16.mxu1 %v1192_v27 }
 0x1f3   :  { %v1166_v25 = vpack.c.bf16 %v723_v23, %v722_v24 }
 0x1f9   :  { %1156 = vmatpush3.bf16.xpose.msk.msra.mxu1 %vm1423_vm7, %v1154_v7 }
 0x1fa   :  { %1157 = vmatprep.subr.bf16.mxu1 %v1192_v27 }
 0x201   :  { %1160 = vmatpush3.bf16.xpose.msk.msra.mxu1 %vm1423_vm7, %v1158_v14 }
 0x202   :  { %1161 = vmatprep.subr.bf16.mxu1 %v1192_v27 }
 0x209   :  { %1164 = vmatpush3.bf16.xpose.msk.msra.mxu1 %vm1423_vm7, %v1162_v21 }
 0x20a   :  { %1165 = vmatprep.subr.bf16.mxu1 %v1192_v27 }
 0x211   :  { %1168 = vmatpush3.bf16.xpose.msk.msra.mxu1 %vm1423_vm7, %v1166_v25 }
 0x218   :  { %1121 = vmatmul.mubr.msk.f32.vlgmr.msra.gmra.mrb[16].mxu1 %vm514_vm5, %v724_v26 }
 0x2eb   :  { %v852_v33 = vpop.f32.mrb[16].mxu1 }
 0x2ec   :  { %v853_v34 = vadd.f32 %v852_v33, %v734_v32  ;;  %v1122_v35 = vpop.f32.mrb[17].mxu1 }
 0x2ee   :  { %856 = vst [vmem:[%s1466_s9] sm:$0x1] %v853_v34 }

</bundles_post_ra>
